<compile_context>
chip_gen: v7x
topology: tpu7x:2x2x1
jax: 0.10.0
libtpu: 0.0.40
codegen_flags: <defaults>
</compile_context>

<pallas_src>
import functools

import jax
import jax.numpy as jnp
import numpy as np
from jax.experimental import pallas as pl
from jax.experimental.pallas import tpu as pltpu

_LANE = 128  # points per matrix row (lane width of the norm tile)


def _sdf_kernel(x_ref, g_ref, o_ref, *, n_steps, valid_last, ragged):
    t = pl.program_id(0)

    @pl.when(t == 0)
    def _init():
        o_ref[...] = jnp.zeros_like(o_ref)

    # (row_tile, 128*D) coordinate tile, native storage dtype -> f32 in-kernel.
    x = x_ref[...].astype(jnp.float32)
    sq = x * x
    # Per-point squared norm via constant 0/1 grouping matrix on the MXU.
    norm = jnp.dot(sq, g_ref[...], preferred_element_type=jnp.float32)  # (rt, 128)
    sdf = jnp.maximum(norm - 1.0, 0.0)

    if ragged:
        # Only the last grid step can read past the end of the (rows, W) view;
        # mask those rows there and only there.  Keep it a select applied to
        # the final sdf so NaN/Inf garbage cannot leak through.
        @pl.when(t == n_steps - 1)
        def _last():
            row = jax.lax.broadcasted_iota(jnp.int32, sdf.shape, 0)
            o_ref[...] += jnp.sum(jnp.where(row < valid_last, sdf, 0.0),
                                  keepdims=True)

        @pl.when(t != n_steps - 1)
        def _hot():
            o_ref[...] += jnp.sum(sdf, keepdims=True)
    else:
        o_ref[...] += jnp.sum(sdf, keepdims=True)


def sdf_loss(points, *, row_tile=1024):
    """Pallas implementation of SDFLoss.forward. Returns a float32 scalar."""
    d = int(points.shape[-1])
    lead = points.shape[:-1]
    n = int(np.prod(lead)) if lead else 1
    if n == 0 or d == 0:
        return jnp.float32(jnp.nan)  # matches mean() of an empty tensor

    w = _LANE * d                                   # row width = 128 points * D
    rows = -(-n // _LANE)                           # ceil(n / 128)
    rows = ((rows + 7) // 8) * 8                    # sublane-align (MXU M dim)

    flat = points.reshape(-1)                       # layout-preserving (free)
    pad = rows * w - n * d
    if pad:
        # <= ~1K zero points; zero points have norm 0 -> sdf 0 -> contribute 0.
        flat = jnp.pad(flat, (0, pad))
    x2d = flat.reshape(rows, w)                     # layout-preserving (free)

    rt = min(int(row_tile), rows)
    if rt < rows:
        rt = max(8, (rt // 8) * 8)
    n_steps = -(-rows // rt)
    valid_last = rows - (n_steps - 1) * rt
    ragged = valid_last != rt

    # Constant grouping matrix: G[j, k] = 1 iff coordinate j of the 384-wide
    # row belongs to point k, i.e. j // d == k.
    g = (jnp.arange(w, dtype=jnp.int32)[:, None] // d
         == jnp.arange(_LANE, dtype=jnp.int32)[None, :]).astype(jnp.float32)

    itemsize = np.dtype(points.dtype).itemsize
    cost = pl.CostEstimate(
        flops=2 * rows * w * _LANE + rows * w + 3 * rows * _LANE,
        transcendentals=0,
        bytes_accessed=rows * w * itemsize + w * _LANE * 4 + 4,
    )

    out = pl.pallas_call(
        functools.partial(_sdf_kernel, n_steps=n_steps,
                          valid_last=valid_last, ragged=ragged),
        out_shape=jax.ShapeDtypeStruct((1, 1), jnp.float32),
        grid_spec=pltpu.PrefetchScalarGridSpec(
            num_scalar_prefetch=0,
            grid=(n_steps,),
            in_specs=[
                pl.BlockSpec((rt, w), lambda t: (t, 0)),        # coordinates
                pl.BlockSpec((w, _LANE), lambda t: (0, 0)),     # grouping G
            ],
            out_specs=pl.BlockSpec((1, 1), lambda t: (0, 0)),   # resident acc
        ),
        compiler_params=pltpu.CompilerParams(
            dimension_semantics=("arbitrary",),
        ),
        cost_estimate=cost,
    )(x2d, g)

    return out[0, 0] / jnp.float32(n)


def sdf_loss_ref(points):
    norm = jnp.sum(points.astype(jnp.float32) ** 2, axis=-1)
    sdf = jnp.maximum(norm - 1.0, 0.0)
    return jnp.mean(sdf)


if __name__ == "__main__":
    key = jax.random.PRNGKey(0)

    # Small point cloud: batch=2, 100 points per batch, 3-D coordinates.
    points = jax.random.normal(key, (2, 100, 3), dtype=jnp.float32) * 1.5
    out = jax.block_until_ready(sdf_loss(points))
    ref = jax.block_until_ready(sdf_loss_ref(points))
    np.testing.assert_allclose(np.asarray(out), np.asarray(ref),
                               rtol=1e-5, atol=1e-6)

    # Exercise the multi-step + ragged-grid (pl.when-masked last tile) path.
    key2 = jax.random.PRNGKey(1)
    points2 = jax.random.normal(key2, (4, 5000, 3), dtype=jnp.float32) * 1.2
    out2 = jax.block_until_ready(sdf_loss(points2, row_tile=48))
    ref2 = jax.block_until_ready(sdf_loss_ref(points2))
    np.testing.assert_allclose(np.asarray(out2), np.asarray(ref2),
                               rtol=1e-5, atol=1e-6)

    print("KERNEL_OK")
</pallas_src>

<mosaic_0001>
module attributes {stable_mosaic.version = 11 : i64} {
  func.func @_sdf_kernel(%arg0: i32, %arg1: memref<8x384xf32, #tpu.memory_space<vmem>>, %arg2: memref<384x128xf32, #tpu.memory_space<vmem>>, %arg3: memref<1x1xf32, #tpu.memory_space<vmem>>) attributes {dimension_semantics = [#tpu.dimension_semantics<arbitrary>], iteration_bounds = array<i64: 1>, scalar_prefetch = 0 : i64, scratch_operands = 0 : i64, tpu.core_type = #tpu.core_type<tc>, window_params = [{transform_indices = @transform_0, window_bounds = array<i64: 8, 384>}, {pipeline_mode = #tpu.pipeline_mode<synchronous>, transform_indices = @transform_1, window_bounds = array<i64: 384, 128>}, {pipeline_mode = #tpu.pipeline_mode<synchronous>, transform_indices = @transform_2, window_bounds = array<i64: 1, 1>}]} {
    %c0_i32 = arith.constant 0 : i32
    %0 = arith.cmpi eq, %arg0, %c0_i32 : i32
    %1 = arith.extui %0 : i1 to i32
    %c0_i32_0 = arith.constant 0 : i32
    %2 = arith.cmpi ne, %1, %c0_i32_0 : i32
    scf.if %2 {
      %cst_11 = arith.constant 0.000000e+00 : f32
      %19 = vector.broadcast %cst_11 : f32 to vector<1x1xf32>
      %c0_12 = arith.constant 0 : index
      %c0_13 = arith.constant 0 : index
      %20 = vector.load %arg3[%c0_12, %c0_13] : memref<1x1xf32, #tpu.memory_space<vmem>>, vector<1x1xf32>
      tpu.vector_store %arg3[%c0_12, %c0_13], %19 {strides = array<i32>} : memref<1x1xf32, #tpu.memory_space<vmem>>, vector<1x1xf32>,
    } else {
    }
    %c0 = arith.constant 0 : index
    %c0_1 = arith.constant 0 : index
    %3 = vector.load %arg1[%c0, %c0_1] : memref<8x384xf32, #tpu.memory_space<vmem>>, vector<8x384xf32>
    %4 = arith.mulf %3, %3 : vector<8x384xf32>
    %c0_2 = arith.constant 0 : index
    %c0_3 = arith.constant 0 : index
    %5 = vector.load %arg2[%c0_2, %c0_3] : memref<384x128xf32, #tpu.memory_space<vmem>>, vector<384x128xf32>
    %cst = arith.constant dense<0.000000e+00> : vector<8x128xf32>
    %6 = tpu.matmul %4, %5, %cst {dimension_numbers = #tpu.dot_dimension_numbers<[1], [0], [0], [1], [0, 0, 1, 1], [], []>} : vector<8x384xf32>, vector<384x128xf32>, vector<8x128xf32> -> vector<8x128xf32>
    %cst_4 = arith.constant 1.000000e+00 : f32
    %7 = vector.broadcast %cst_4 : f32 to vector<8x128xf32>
    %8 = arith.subf %6, %7 : vector<8x128xf32>
    %cst_5 = arith.constant 0.000000e+00 : f32
    %9 = vector.broadcast %cst_5 : f32 to vector<8x128xf32>
    %10 = arith.maximumf %8, %9 : vector<8x128xf32>
    %c0_6 = arith.constant 0 : index
    %c0_7 = arith.constant 0 : index
    %11 = vector.load %arg3[%c0_6, %c0_7] : memref<1x1xf32, #tpu.memory_space<vmem>>, vector<1x1xf32>
    %12 = vector.shape_cast %10 : vector<8x128xf32> to vector<1x8x128xf32>
    %cst_8 = arith.constant dense<0.000000e+00> : vector<1xf32>
    %13 = vector.multi_reduction <add>, %12, %cst_8 [1, 2] : vector<1x8x128xf32> to vector<1xf32>
    %14 = vector.shape_cast %13 : vector<1xf32> to vector<1x1x1xf32>
    %15 = vector.extract %14[0, 0, 0] : f32 from vector<1x1x1xf32>
    %16 = vector.broadcast %15 : f32 to vector<1x1xf32>
    %17 = arith.addf %11, %16 : vector<1x1xf32>
    %c0_9 = arith.constant 0 : index
    %c0_10 = arith.constant 0 : index
    %18 = vector.load %arg3[%c0_9, %c0_10] : memref<1x1xf32, #tpu.memory_space<vmem>>, vector<1x1xf32>
    tpu.vector_store %arg3[%c0_9, %c0_10], %17 {strides = array<i32>} : memref<1x1xf32, #tpu.memory_space<vmem>>, vector<1x1xf32>,
    return
  }
  func.func @transform_0(%arg0: i32) -> (i32, i32) {
    %c0_i32 = arith.constant 0 : i32
    %c0_i32_0 = arith.constant 0 : i32
    return %arg0, %c0_i32 : i32, i32
  }
  func.func @transform_1(%arg0: i32) -> (i32, i32) {
    %c0_i32 = arith.constant 0 : i32
    %c0_i32_0 = arith.constant 0 : i32
    %c0_i32_1 = arith.constant 0 : i32
    return %c0_i32, %c0_i32_0 : i32, i32
  }
  func.func @transform_2(%arg0: i32) -> (i32, i32) {
    %c0_i32 = arith.constant 0 : i32
    %c0_i32_0 = arith.constant 0 : i32
    %c0_i32_1 = arith.constant 0 : i32
    return %c0_i32, %c0_i32_0 : i32, i32
  }
}

</mosaic_0001>

<bundles_post_ra>
// kernel: tpu_custom_call.1
= control target key start
LH: loop header
LB: loop body
LE: loop exit
PB: predicated region body
PF: predicated region fallthrough
CT: control target
= control target key end

     0   :  { %7 = vsyncpa [#allocation3], 0  ;;  %s572_s0 = inlined_call_operand.hbm [shape: f32[8,384], index: 0, kind: input, shape index: {}]   ;;  %s573_s1 = inlined_call_operand.hbm [shape: f32[384,128], index: 1, kind: input, shape index: {}]   ;;  %s574_s2 = inlined_call_operand.hbm [shape: f32[1,1], index: 2, kind: output, shape index: {}]  }
   0x1   :  { %8 = vsyncpa [#allocation6], 0 }
   0x2   :  { %9 = vsyncpa [#allocation4], 0  ;;  %s496_s9 = smov [#allocation2]   ;;  %s497_s11 = smov [#allocation5]  }
   0x3   :  { %s16_s10 = sshll.u32 %s496_s9, 4  ;;  %s25_s12 = sshll.u32 %s497_s11, 4  ;;  %s17_s10 = int_to_ptr.vmem [resolvable:$true] %s16_s10  ;;  %s519_s12 = int_to_ptr.vmem [resolvable:$true] %s25_s12 }
   0x4   :  { %s424_s15 = scalar_lea.hbm %s572_s0, 384 }
   0x5   :  { %p425_p0 = scmp.ne.s32.totalorder %s572_s0, %s424_s15  ;;  %p428_p1 = scmp.lt.u32.totalorder %s424_s15, %s572_s0 }
   0x7   :  { %p430_p2 = pnand %p428_p1, %p425_p0 }
   0x9   :  { %433 = shalt.err (!%p430_p2)
}
   0xa   :  { %s434_s20 = scalar_lea.vmem %s17_s10, 384  ;;  %p439_p4 = scmp.lt.s32.totalorder %s17_s10, %s17_s10 }
   0xb   :  { %p435_p3 = scmp.ne.s32.totalorder %s17_s10, %s434_s20  ;;  %p440_p5 = scmp.lt.s32.totalorder %s434_s20, %s434_s20 }
   0xd   :  { %p441_p6 = por %p440_p5, %p439_p4 }
   0xf   :  { %p442_p7 = pnand %p441_p6, %p435_p3 }
  0x11   :  { %445 = shalt.err (!%p442_p7)
}
  0x12   :  { %19 = dma.hbm_to_vmem [thread:$0]  %s572_s0, 384, %s17_s10, [#allocation3]  }
  0x13   :  { %s446_s25 = scalar_lea.hbm %s573_s1, 6144 }
  0x14   :  { %p447_p8 = scmp.ne.s32.totalorder %s573_s1, %s446_s25  ;;  %p450_p9 = scmp.lt.u32.totalorder %s446_s25, %s573_s1 }
  0x16   :  { %p452_p10 = pnand %p450_p9, %p447_p8 }
  0x18   :  { %455 = shalt.err (!%p452_p10)
}
  0x19   :  { %s456_s30 = scalar_lea.vmem %s519_s12, 6144  ;;  %p461_p12 = scmp.lt.s32.totalorder %s519_s12, %s519_s12 }
  0x1a   :  { %p457_p11 = scmp.ne.s32.totalorder %s519_s12, %s456_s30  ;;  %p462_p13 = scmp.lt.s32.totalorder %s456_s30, %s456_s30 }
  0x1c   :  { %p463_p0 = por %p462_p13, %p461_p12 }
  0x1e   :  { %p464_p1 = pnand %p463_p0, %p457_p11 }
  0x20   :  { %467 = shalt.err (!%p464_p1)
}
  0x21   :  { %s498_s0 = smov 128   ;;  %s499_s3 = smov 8  }
  0x22   :  { %31 = dma.hbm_to_vmem [thread:$0]  %s573_s1, 6144, %s519_s12, [#allocation6], %s498_s0, %s498_s0, %s499_s3  }
  0x23   :  { %490 = dma.done.wait [#allocation3], 384  }
  0x24   :  { %491 = vsyncadd [#allocation3], 4294966912 }
  0x25   :  { %492 = dma.done.wait [#allocation6], 6144  }
  0x26   :  { %493 = vsyncadd [#allocation6], 4294961152  ;;  %vm42_vm0 = vcmask 0   ;;  %v500_v0 = vmov 0.0|0.0   ;;  %v501_v1 = vmov 0.0   ;;  %vm502_vm1 = vmmov 0  }
  0x27   :  { %390 = vmatprep.subr.bf16.mxu1 %v500_v0  ;;  %43 = vst.msk [vmem:[#allocation7] sm:$0x1] %vm42_vm0, %v501_v1  ;;  %355 = vmatprep.mubr.msk.f32.mxu1 %vm502_vm1, %v501_v1  ;;  %v66_v2 = vld [vmem:[#allocation5 + $0x80] sm:$0xff]  ;;  %v67_v3 = vld [vmem:[#allocation5 + $0x88] sm:$0xff]  ;;  %v68_v11 = vld [vmem:[#allocation5 + $0x90] sm:$0xff]  ;;  %s503_s1 = smov [#allocation7]  }
  0x28   :  { %v50_v4 = vld [vmem:[#allocation5] sm:$0xff]  ;;  %v358_v5 = vpack.c.bf16 %v67_v3, %v66_v2  ;;  %v51_v6 = vld [vmem:[#allocation5 + $0x8] sm:$0xff]  ;;  %v69_v12 = vld [vmem:[#allocation5 + $0x98] sm:$0xff]  ;;  %s260_s6 = sshll.u32 %s503_s1, 4  ;;  %s261_s6 = int_to_ptr.vmem [resolvable:$true] %s260_s6 }
  0x29   :  { %v82_v7 = vld [vmem:[#allocation5 + $0x100] sm:$0xff]  ;;  %v83_v8 = vld [vmem:[#allocation5 + $0x108] sm:$0xff]  ;;  %v360_v9 = vpack.c.bf16 %v51_v6, %v50_v4  ;;  %v52_v13 = vld [vmem:[#allocation5 + $0x10] sm:$0xff]  ;;  %v362_v14 = vpack.c.bf16 %v69_v12, %v68_v11  ;;  %s468_s8 = scalar_lea.vmem %s261_s6, 16  ;;  %s472_s9 = scalar_lea.vmem %s261_s6, 32 }
  0x2a   :  { %v391_v10 = vpack.c.bf16 %v83_v8, %v82_v7  ;;  %359 = vmatprep.subr.bf16.mxu0 %v358_v5  ;;  %v53_v15 = vld [vmem:[#allocation5 + $0x18] sm:$0xff]  ;;  %v84_v16 = vld [vmem:[#allocation5 + $0x110] sm:$0xff]  ;;  %v70_v20 = vld [vmem:[#allocation5 + $0xa0] sm:$0xff]  ;;  %p469_p2 = scmp.ne.s32.totalorder %s261_s6, %s468_s8  ;;  %p473_p3 = scmp.lt.s32.totalorder %s261_s6, %s261_s6 }
  0x2b   :  { %v85_v17 = vld [vmem:[#allocation5 + $0x118] sm:$0xff]  ;;  %361 = vmatpush3.bf16.msra.mxu0 %v360_v9  ;;  %v364_v18 = vpack.c.bf16 %v53_v15, %v52_v13  ;;  %v71_v21 = vld [vmem:[#allocation5 + $0xa8] sm:$0xff]  ;;  %v54_v22 = vld [vmem:[#allocation5 + $0x20] sm:$0xff]  ;;  %p474_p4 = scmp.lt.s32.totalorder %s472_s9, %s468_s8 }
  0x2c   :  { %392 = vmatpush3.bf16.msra.mxu1 %v391_v10  ;;  %v394_v19 = vpack.c.bf16 %v85_v17, %v84_v16  ;;  %363 = vmatprep.subr.bf16.mxu0 %v362_v14  ;;  %v366_v23 = vpack.c.bf16 %v71_v21, %v70_v20  ;;  %v55_v24 = vld [vmem:[#allocation5 + $0x28] sm:$0xff]  ;;  %v86_v25 = vld [vmem:[#allocation5 + $0x120] sm:$0xff]  ;;  %v72_v27 = vld [vmem:[#allocation5 + $0xb0] sm:$0xff] }
  0x2d   :  { %393 = vmatprep.subr.bf16.mxu1 %v500_v0  ;;  %v87_v26 = vld [vmem:[#allocation5 + $0x128] sm:$0xff]  ;;  %v73_v28 = vld [vmem:[#allocation5 + $0xb8] sm:$0xff]  ;;  %v368_v29 = vpack.c.bf16 %v55_v24, %v54_v22  ;;  %v56_v31 = vld [vmem:[#allocation5 + $0x30] sm:$0xff]  ;;  %p475_p5 = por %p474_p4, %p473_p3 }
  0x2e   :  { %v397_v30 = vpack.c.bf16 %v87_v26, %v86_v25  ;;  %v370_v32 = vpack.c.bf16 %v73_v28, %v72_v27  ;;  %v57_v33 = vld [vmem:[#allocation5 + $0x38] sm:$0xff]  ;;  %v88_v34 = vld [vmem:[#allocation5 + $0x130] sm:$0xff]  ;;  %v74_v36 = vld [vmem:[#allocation5 + $0xc0] sm:$0xff] }
  0x2f   :  { %365 = vmatpush3.bf16.msra.mxu0 %v364_v18  ;;  %v89_v35 = vld [vmem:[#allocation5 + $0x138] sm:$0xff]  ;;  %v75_v37 = vld [vmem:[#allocation5 + $0xc8] sm:$0xff]  ;;  %v372_v38 = vpack.c.bf16 %v57_v33, %v56_v31  ;;  %v58_v40 = vld [vmem:[#allocation5 + $0x40] sm:$0xff]  ;;  %p476_p6 = pnand %p475_p5, %p469_p2 }
  0x30   :  { %395 = vmatpush3.bf16.msra.mxu1 %v394_v19  ;;  %367 = vmatprep.subr.bf16.mxu0 %v366_v23  ;;  %v400_v39 = vpack.c.bf16 %v89_v35, %v88_v34  ;;  %v374_v41 = vpack.c.bf16 %v75_v37, %v74_v36  ;;  %v59_v42 = vld [vmem:[#allocation5 + $0x48] sm:$0xff]  ;;  %v90_v43 = vld [vmem:[#allocation5 + $0x140] sm:$0xff]  ;;  %v76_v45 = vld [vmem:[#allocation5 + $0xd0] sm:$0xff] }
  0x31   :  { %396 = vmatprep.subr.bf16.mxu1 %v500_v0  ;;  %v91_v44 = vld [vmem:[#allocation5 + $0x148] sm:$0xff]  ;;  %v77_v46 = vld [vmem:[#allocation5 + $0xd8] sm:$0xff]  ;;  %v45_v47 = vld [vmem:[#allocation2 + $0x8] sm:$0xff]  ;;  %v376_v48 = vpack.c.bf16 %v59_v42, %v58_v40 }
  0x32   :  { %v403_v49 = vpack.c.bf16 %v91_v44, %v90_v43  ;;  %v60_v50 = vld [vmem:[#allocation5 + $0x50] sm:$0xff]  ;;  %v48_v51 = vmul.f32 %v45_v47, %v45_v47  ;;  %v378_v52 = vpack.c.bf16 %v77_v46, %v76_v45  ;;  %v61_v53 = vld [vmem:[#allocation5 + $0x58] sm:$0xff]  ;;  %v78_v56 = vld [vmem:[#allocation5 + $0xe0] sm:$0xff] }
  0x33   :  { %369 = vmatpush3.bf16.msra.mxu0 %v368_v29  ;;  %v92_v54 = vld [vmem:[#allocation5 + $0x150] sm:$0xff]  ;;  %v93_v55 = vld [vmem:[#allocation5 + $0x158] sm:$0xff]  ;;  %v79_v57 = vld [vmem:[#allocation5 + $0xe8] sm:$0xff]  ;;  %v380_v58 = vpack.c.bf16 %v61_v53, %v60_v50 }
  0x34   :  { %398 = vmatpush3.bf16.msra.mxu1 %v397_v30  ;;  %371 = vmatprep.subr.bf16.mxu0 %v370_v32  ;;  %v406_v59 = vpack.c.bf16 %v93_v55, %v92_v54  ;;  %v62_v60 = vld [vmem:[#allocation5 + $0x60] sm:$0xff]  ;;  %v382_v61 = vpack.c.bf16 %v79_v57, %v78_v56  ;;  %v63_v62 = vld [vmem:[#allocation5 + $0x68] sm:$0xff]  ;;  %v80_v2 = vld [vmem:[#allocation5 + $0xf0] sm:$0xff] }
  0x35   :  { %399 = vmatprep.subr.bf16.mxu1 %v500_v0  ;;  %162 = vmatprep.mubr.f32.mxu0 %v48_v51  ;;  %v94_v63 = vld [vmem:[#allocation5 + $0x160] sm:$0xff]  ;;  %v95_v1 = vld [vmem:[#allocation5 + $0x168] sm:$0xff]  ;;  %v81_v3 = vld [vmem:[#allocation5 + $0xf8] sm:$0xff]  ;;  %v384_v4 = vpack.c.bf16 %v63_v62, %v62_v60 }
  0x36   :  { %v409_v5 = vpack.c.bf16 %v95_v1, %v94_v63  ;;  %v64_v6 = vld [vmem:[#allocation5 + $0x70] sm:$0xff]  ;;  %v386_v7 = vpack.c.bf16 %v81_v3, %v80_v2  ;;  %v65_v8 = vld [vmem:[#allocation5 + $0x78] sm:$0xff]  ;;  %v44_v13 = vld [vmem:[#allocation2] sm:$0xff] }
  0x37   :  { %373 = vmatpush3.bf16.msra.mxu0 %v372_v38  ;;  %v96_v9 = vld [vmem:[#allocation5 + $0x170] sm:$0xff]  ;;  %v97_v10 = vld [vmem:[#allocation5 + $0x178] sm:$0xff]  ;;  %v388_v11 = vpack.c.bf16 %v65_v8, %v64_v6  ;;  %v47_v15 = vmul.f32 %v44_v13, %v44_v13  ;;  %v240_v31 = vld [vmem:[#allocation7] sm:$0x1] }
  0x38   :  { %401 = vmatpush3.bf16.msra.mxu1 %v400_v39  ;;  %375 = vmatprep.subr.bf16.mxu0 %v374_v41  ;;  %v412_v12 = vpack.c.bf16 %v97_v10, %v96_v9  ;;  %v46_v14 = vld [vmem:[#allocation2 + $0x10] sm:$0xff] }
  0x39   :  { %402 = vmatprep.subr.bf16.mxu1 %v500_v0  ;;  %v49_v16 = vmul.f32 %v46_v14, %v46_v14 }
  0x3b   :  { %377 = vmatpush3.bf16.msra.mxu0 %v376_v48 }
  0x3c   :  { %404 = vmatpush3.bf16.msra.mxu1 %v403_v49  ;;  %379 = vmatprep.subr.bf16.mxu0 %v378_v52 }
  0x3d   :  { %405 = vmatprep.subr.bf16.mxu1 %v500_v0 }
  0x3f   :  { %381 = vmatpush3.bf16.msra.mxu0 %v380_v58 }
  0x40   :  { %407 = vmatpush3.bf16.msra.mxu1 %v406_v59  ;;  %383 = vmatprep.subr.bf16.mxu0 %v382_v61 }
  0x41   :  { %408 = vmatprep.subr.bf16.mxu1 %v500_v0 }
  0x43   :  { %385 = vmatpush3.bf16.msra.mxu0 %v384_v4 }
  0x44   :  { %410 = vmatpush3.bf16.msra.mxu1 %v409_v5  ;;  %387 = vmatprep.subr.bf16.mxu0 %v386_v7 }
  0x45   :  { %411 = vmatprep.subr.bf16.mxu1 %v500_v0 }
  0x47   :  { %389 = vmatpush3.bf16.msra.mxu0 %v388_v11 }
  0x48   :  { %413 = vmatpush3.bf16.msra.mxu1 %v412_v12 }
  0x4a   :  { %163 = vmatmul.mubr.f32.vlgmr.msra.gmra.mrb[0].mxu0 %v47_v15 }
  0x4b   :  { %356 = vmatmul.mubr.f32.vlgmr.msra.gmra.mrb[0].mxu1 %v49_v16 }
 0x11d   :  { %v303_v17 = vpop.f32.mrb[0].mxu0 }
 0x11e   :  { %v234_v18 = vpop.f32.mrb[0].mxu1  ;;  %v304_v19 = vpop.f32.mrb[1].mxu0 }
 0x11f   :  { %v357_v20 = vpop.f32.mrb[1].mxu1  ;;  %v305_v21 = vadd.f32 %v304_v19, %v303_v17 }
 0x121   :  { %v235_v22 = vadd.f32 %v305_v21, %v234_v18 }
 0x123   :  { %v270_v23 = vadd.f32 -1.0, %v235_v22 }
 0x125   :  { %v239_v24 = vmax.f32 %v270_v23, 0.0 }
 0x127   :  { %241 = vadd.xlane.f32.xlu0 %v239_v24 }
 0x1b4   :  { %v242_v25 = vpop.xlane.xlu0 %241 }
 0x1b5   :  { %v243_v26 = vrot.slane %v242_v25, 4 }
 0x1b7   :  { %v244_v27 = vadd.f32 %v243_v26, %v242_v25 }
 0x1b9   :  { %v245_v28 = vrot.slane %v244_v27, 2 }
 0x1bb   :  { %v246_v0 = vadd.f32 %v245_v28, %v244_v27 }
 0x1bd   :  { %v247_v29 = vrot.slane %v246_v0, 1 }
 0x1bf   :  { %v248_v30 = vadd.f32 %v247_v29, %v246_v0 }
 0x1c1   :  { %414 = vpush %v248_v30 }
 0x1f2   :  { %s415_s7 = spop %414 }
 0x1f3   :  { %v250_v32 = vstv %s415_s7 }
 0x1f4   :  { %v251_v33 = vadd.f32 %v250_v32, %v240_v31 }
 0x1f6   :  { %253 = vst.msk [vmem:[#allocation7] sm:$0x1] %vm42_vm0, %v251_v33 }
 0x1f7   :  { %479 = shalt.err (!%p476_p6)
}
 0x1f8   :  { %s480_s12 = scalar_lea.hbm %s574_s2, 16 }
 0x1f9   :  { %p481_p7 = scmp.ne.s32.totalorder %s574_s2, %s480_s12  ;;  %p484_p8 = scmp.lt.u32.totalorder %s480_s12, %s574_s2 }
 0x1fb   :  { %p486_p9 = pnand %p484_p8, %p481_p7 }
 0x1fd   :  { %489 = shalt.err (!%p486_p9)
}
 0x1fe   :  { %263 = dma.vmem_to_hbm [thread:$0]  %s261_s6, 16, %s574_s2, [#allocation4]  }
 0x1ff   :  { %494 = dma.done.wait [#allocation4], 16  }
 0x200   :  { %495 = vsyncadd [#allocation4], 4294967280 }
 0x201   :  { %267 = vsyncpa [#allocation3], 1 }
 0x202   :  { %268 = vsyncpa [#allocation6], 1 }
 0x203   :  { %269 = vsyncpa [#allocation4], 1 }

</bundles_post_ra>
